<compile_context>
chip_gen: v5e
topology: v5e:2x2
jax: 0.10.0
libtpu: 0.0.40
codegen_flags: <defaults>
</compile_context>

<pallas_src>
import functools
import math

import jax
import jax.numpy as jnp
from jax.experimental import pallas as pl
from jax.experimental.pallas import tpu as pltpu


def mha_kernel(x_ref, wqkv_ref, bqkv_ref, wo_ref, bo_ref, o_ref, ctx_ref, *,
               B, S, D, num_heads, d_k):
    N = B * S

    # ---- fused head-major Q/K/V projection: one (N, D) @ (D, 3D) MXU matmul ----
    # (softmax scale is already folded into the Q columns / bias host-side)
    qkv = jnp.dot(x_ref[...], wqkv_ref[...],
                  preferred_element_type=jnp.float32) + bqkv_ref[...]     # (N, 3D)
    # tile-aligned leading-dim split (S is a multiple of the f32 sublane tile 8)
    qkv = qkv.reshape(B, S, 3 * D)                                        # (B, S, 3D)

    for h in range(num_heads):
        base = h * 3 * d_k          # head-major packing: [q_h | k_h | v_h] contiguous
        q_h = qkv[:, :, base:base + d_k]                                  # (B, S, dk)
        k_h = qkv[:, :, base + d_k:base + 2 * d_k]                        # (B, S, dk)
        v_h = qkv[:, :, base + 2 * d_k:base + 3 * d_k]                    # (B, S, dk)

        # scores: batched over B, contracting d_k directly (no transpose anywhere)
        s = jnp.einsum('bqd,bkd->bqk', q_h, k_h,
                       preferred_element_type=jnp.float32)                # (B, S, S)

        # numerically-stable, exact softmax (f32 throughout)
        m = jnp.max(s, axis=-1, keepdims=True)
        e = jnp.exp(s - m)
        p = e / jnp.sum(e, axis=-1, keepdims=True)

        ctx_h = jnp.einsum('bqk,bkd->bqd', p, v_h,
                           preferred_element_type=jnp.float32)            # (B, S, dk)

        # head h occupies lanes [h*dk, (h+1)*dk) of the concatenated context
        ctx_ref[:, h * d_k:(h + 1) * d_k] = ctx_h.reshape(N, d_k)

    # ---- single wide output projection: one (N, D) @ (D, D) MXU matmul ---------
    o_ref[...] = (jnp.dot(ctx_ref[...], wo_ref[...],
                          preferred_element_type=jnp.float32)
                  + bo_ref[...]).astype(o_ref.dtype)


def multi_head_attention(x, params, *, num_heads):
    B, S, D = x.shape
    assert D % num_heads == 0, "d_model must divide evenly into heads"
    d_k = D // num_heads
    # The in-kernel (B*S, 3D) -> (B, S, 3D) reshape is only free because S matches
    # the f32 sublane tile; enforce the assumption instead of silently paying for it.
    assert S % 8 == 0, "S must be a multiple of 8 (f32 sublane tile)"

    wq, bq, wk, bk, wv, bv, wo, bo = params
    scale = 1.0 / math.sqrt(float(d_k))

    # Host-side packing (cheap, once per call, outside the kernel):
    #   - pre-transpose all weights to (in, out)
    #   - fold the 1/sqrt(d_k) scale into the Q projection (weights + bias)
    #   - reorder Q/K/V columns head-major: [q_0|k_0|v_0 | q_1|k_1|v_1 | ...]
    wq_t = wq.T * scale                      # (D, D), scale folded in
    wk_t = wk.T
    wv_t = wv.T
    bq_s = bq * scale

    w_cols, b_cols = [], []
    for h in range(num_heads):
        sl = slice(h * d_k, (h + 1) * d_k)
        w_cols += [wq_t[:, sl], wk_t[:, sl], wv_t[:, sl]]
        b_cols += [bq_s[sl], bk[sl], bv[sl]]
    wqkv_t = jnp.concatenate(w_cols, axis=1)                 # (D, 3D), head-major
    bqkv = jnp.concatenate(b_cols).reshape(1, 3 * D)         # (1, 3D), head-major
    wo_t = wo.T                                              # (D, D) = (in, out)
    bo2 = bo.reshape(1, D)                                   # (1, D)
    x2 = x.reshape(B * S, D)                                 # flatten rows (free)

    kernel = functools.partial(mha_kernel, B=B, S=S, D=D,
                               num_heads=num_heads, d_k=d_k)

    out = pl.pallas_call(
        kernel,
        out_shape=jax.ShapeDtypeStruct((B * S, D), x.dtype),
        grid_spec=pltpu.PrefetchScalarGridSpec(
            num_scalar_prefetch=0,
            # Whole problem in one grid step: weights land in VMEM exactly once and
            # there is no per-step overhead. Correct choice while per-core work is
            # well under a few microseconds (see TODO at top for the scaled design).
            grid=(1,),
            in_specs=[
                pl.BlockSpec((B * S, D), lambda i: (0, 0)),   # x rows
                pl.BlockSpec((D, 3 * D), lambda i: (0, 0)),   # fused head-major Wqkv^T
                pl.BlockSpec((1, 3 * D), lambda i: (0, 0)),   # fused head-major qkv bias
                pl.BlockSpec((D, D), lambda i: (0, 0)),       # Wo^T
                pl.BlockSpec((1, D), lambda i: (0, 0)),       # bo
            ],
            out_specs=pl.BlockSpec((B * S, D), lambda i: (0, 0)),
            scratch_shapes=[pltpu.VMEM((B * S, D), jnp.float32)],   # concat'd context
        ),
        compiler_params=pltpu.CompilerParams(
            dimension_semantics=("arbitrary",)),
    )(x2, wqkv_t, bqkv, wo_t, bo2)

    return out.reshape(B, S, D)


def mha_reference(x, params, *, num_heads):
    # pure-JAX reference mirroring the PyTorch forward
    B, S, D = x.shape
    d_k = D // num_heads
    wq, bq, wk, bk, wv, bv, wo, bo = params
    q = (x @ wq.T + bq).reshape(B, S, num_heads, d_k).transpose(0, 2, 1, 3)
    k = (x @ wk.T + bk).reshape(B, S, num_heads, d_k).transpose(0, 2, 1, 3)
    v = (x @ wv.T + bv).reshape(B, S, num_heads, d_k).transpose(0, 2, 1, 3)
    scores = jnp.einsum("bhqd,bhkd->bhqk", q, k) / jnp.sqrt(jnp.float32(d_k))
    attn = jax.nn.softmax(scores, axis=-1)
    ctx = jnp.einsum("bhqk,bhkd->bhqd", attn, v)
    ctx = ctx.transpose(0, 2, 1, 3).reshape(B, S, D)
    return ctx @ wo.T + bo


if __name__ == "__main__":
    # config: d_model=32, num_heads=4 -> d_k=8 ; batch=2, seq=8
    B, S, D, H = 2, 8, 32, 4

    key = jax.random.PRNGKey(0)
    keys = jax.random.split(key, 9)
    x = jax.random.normal(keys[0], (B, S, D), dtype=jnp.float32)

    # deterministic nn.Linear-style params: W (out, in), b (out,)
    bound = 1.0 / math.sqrt(D)
    def lin(kw, kb):
        w = jax.random.uniform(kw, (D, D), jnp.float32, -bound, bound)
        b = jax.random.uniform(kb, (D,), jnp.float32, -bound, bound)
        return w, b

    wq, bq = lin(keys[1], keys[2])
    wk, bk = lin(keys[3], keys[4])
    wv, bv = lin(keys[5], keys[6])
    wo, bo = lin(keys[7], keys[8])
    params = (wq, bq, wk, bk, wv, bv, wo, bo)

    out = multi_head_attention(x, params, num_heads=H)
    out = jax.block_until_ready(out)

    ref = mha_reference(x, params, num_heads=H)
    assert out.shape == (B, S, D)
    # exact f32 math everywhere (no approx reciprocal) -> tight f32 tolerance
    assert jnp.allclose(out, ref, atol=1e-4, rtol=1e-4), "mismatch vs reference"

    print("KERNEL_OK")
</pallas_src>

<mosaic_0001>
module attributes {stable_mosaic.version = 11 : i64} {
  func.func @mha_kernel(%arg0: i32, %arg1: memref<16x32xf32, #tpu.memory_space<vmem>>, %arg2: memref<32x96xf32, #tpu.memory_space<vmem>>, %arg3: memref<1x96xf32, #tpu.memory_space<vmem>>, %arg4: memref<32x32xf32, #tpu.memory_space<vmem>>, %arg5: memref<1x32xf32, #tpu.memory_space<vmem>>, %arg6: memref<16x32xf32, #tpu.memory_space<vmem>>, %arg7: memref<16x32xf32, #tpu.memory_space<vmem>>) attributes {dimension_semantics = [#tpu.dimension_semantics<arbitrary>], iteration_bounds = array<i64: 1>, scalar_prefetch = 0 : i64, scratch_operands = 1 : i64, tpu.core_type = #tpu.core_type<tc>, window_params = [{pipeline_mode = #tpu.pipeline_mode<synchronous>, transform_indices = @transform_0, window_bounds = array<i64: 16, 32>}, {pipeline_mode = #tpu.pipeline_mode<synchronous>, transform_indices = @transform_1, window_bounds = array<i64: 32, 96>}, {pipeline_mode = #tpu.pipeline_mode<synchronous>, transform_indices = @transform_2, window_bounds = array<i64: 1, 96>}, {pipeline_mode = #tpu.pipeline_mode<synchronous>, transform_indices = @transform_3, window_bounds = array<i64: 32, 32>}, {pipeline_mode = #tpu.pipeline_mode<synchronous>, transform_indices = @transform_4, window_bounds = array<i64: 1, 32>}, {pipeline_mode = #tpu.pipeline_mode<synchronous>, transform_indices = @transform_5, window_bounds = array<i64: 16, 32>}]} {
    %c0 = arith.constant 0 : index
    %c0_0 = arith.constant 0 : index
    %0 = vector.load %arg1[%c0, %c0_0] : memref<16x32xf32, #tpu.memory_space<vmem>>, vector<16x32xf32>
    %c0_1 = arith.constant 0 : index
    %c0_2 = arith.constant 0 : index
    %1 = vector.load %arg2[%c0_1, %c0_2] : memref<32x96xf32, #tpu.memory_space<vmem>>, vector<32x96xf32>
    %cst = arith.constant dense<0.000000e+00> : vector<16x96xf32>
    %2 = tpu.matmul %0, %1, %cst {dimension_numbers = #tpu.dot_dimension_numbers<[1], [0], [0], [1], [0, 0, 1, 1], [], []>} : vector<16x32xf32>, vector<32x96xf32>, vector<16x96xf32> -> vector<16x96xf32>
    %c0_3 = arith.constant 0 : index
    %c0_4 = arith.constant 0 : index
    %3 = vector.load %arg3[%c0_3, %c0_4] : memref<1x96xf32, #tpu.memory_space<vmem>>, vector<1x96xf32>
    %4 = vector.broadcast %3 : vector<1x96xf32> to vector<16x96xf32>
    %5 = arith.addf %2, %4 : vector<16x96xf32>
    %6 = vector.shape_cast %5 : vector<16x96xf32> to vector<2x8x96xf32>
    %7 = vector.extract_strided_slice %6 {offsets = [0, 0, 0], sizes = [2, 8, 8], strides = [1, 1, 1]} : vector<2x8x96xf32> to vector<2x8x8xf32>
    %8 = vector.extract_strided_slice %6 {offsets = [0, 0, 8], sizes = [2, 8, 8], strides = [1, 1, 1]} : vector<2x8x96xf32> to vector<2x8x8xf32>
    %9 = vector.extract_strided_slice %6 {offsets = [0, 0, 16], sizes = [2, 8, 8], strides = [1, 1, 1]} : vector<2x8x96xf32> to vector<2x8x8xf32>
    "tpu.trace_start"() <{level = 10 : i32, message = "bqd,bkd->bqk"}> : () -> ()
    %cst_5 = arith.constant dense<0.000000e+00> : vector<2x8x8xf32>
    %10 = tpu.matmul %7, %8, %cst_5 {dimension_numbers = #tpu.dot_dimension_numbers<[2], [2], [1], [1], [0, 0, 0, 1, 1, 1], [0], [0]>} : vector<2x8x8xf32>, vector<2x8x8xf32>, vector<2x8x8xf32> -> vector<2x8x8xf32>
    "tpu.trace_stop"() : () -> ()
    %cst_6 = arith.constant dense<0xFF800000> : vector<2x8xf32>
    %11 = vector.multi_reduction <maximumf>, %10, %cst_6 [2] : vector<2x8x8xf32> to vector<2x8xf32>
    %12 = vector.shape_cast %11 : vector<2x8xf32> to vector<2x8x1xf32>
    %13 = vector.broadcast %12 : vector<2x8x1xf32> to vector<2x8x8xf32>
    %14 = arith.subf %10, %13 : vector<2x8x8xf32>
    %15 = math.exp %14 : vector<2x8x8xf32>
    %cst_7 = arith.constant dense<0.000000e+00> : vector<2x8xf32>
    %16 = vector.multi_reduction <add>, %15, %cst_7 [2] : vector<2x8x8xf32> to vector<2x8xf32>
    %17 = vector.shape_cast %16 : vector<2x8xf32> to vector<2x8x1xf32>
    %18 = vector.broadcast %17 : vector<2x8x1xf32> to vector<2x8x8xf32>
    %19 = arith.divf %15, %18 : vector<2x8x8xf32>
    "tpu.trace_start"() <{level = 10 : i32, message = "bqk,bkd->bqd"}> : () -> ()
    %cst_8 = arith.constant dense<0.000000e+00> : vector<2x8x8xf32>
    %20 = tpu.matmul %19, %9, %cst_8 {dimension_numbers = #tpu.dot_dimension_numbers<[2], [1], [1], [2], [0, 0, 0, 1, 1, 2], [0], [0]>} : vector<2x8x8xf32>, vector<2x8x8xf32>, vector<2x8x8xf32> -> vector<2x8x8xf32>
    "tpu.trace_stop"() : () -> ()
    %21 = vector.shape_cast %20 : vector<2x8x8xf32> to vector<16x8xf32>
    %c0_9 = arith.constant 0 : index
    %c0_10 = arith.constant 0 : index
    %22 = vector.load %arg7[%c0_9, %c0_10] : memref<16x32xf32, #tpu.memory_space<vmem>>, vector<16x8xf32>
    tpu.vector_store %arg7[%c0_9, %c0_10], %21 {strides = array<i32>} : memref<16x32xf32, #tpu.memory_space<vmem>>, vector<16x8xf32>,
    %23 = vector.extract_strided_slice %6 {offsets = [0, 0, 24], sizes = [2, 8, 8], strides = [1, 1, 1]} : vector<2x8x96xf32> to vector<2x8x8xf32>
    %24 = vector.extract_strided_slice %6 {offsets = [0, 0, 32], sizes = [2, 8, 8], strides = [1, 1, 1]} : vector<2x8x96xf32> to vector<2x8x8xf32>
    %25 = vector.extract_strided_slice %6 {offsets = [0, 0, 40], sizes = [2, 8, 8], strides = [1, 1, 1]} : vector<2x8x96xf32> to vector<2x8x8xf32>
    "tpu.trace_start"() <{level = 10 : i32, message = "bqd,bkd->bqk"}> : () -> ()
    %cst_11 = arith.constant dense<0.000000e+00> : vector<2x8x8xf32>
    %26 = tpu.matmul %23, %24, %cst_11 {dimension_numbers = #tpu.dot_dimension_numbers<[2], [2], [1], [1], [0, 0, 0, 1, 1, 1], [0], [0]>} : vector<2x8x8xf32>, vector<2x8x8xf32>, vector<2x8x8xf32> -> vector<2x8x8xf32>
    "tpu.trace_stop"() : () -> ()
    %cst_12 = arith.constant dense<0xFF800000> : vector<2x8xf32>
    %27 = vector.multi_reduction <maximumf>, %26, %cst_12 [2] : vector<2x8x8xf32> to vector<2x8xf32>
    %28 = vector.shape_cast %27 : vector<2x8xf32> to vector<2x8x1xf32>
    %29 = vector.broadcast %28 : vector<2x8x1xf32> to vector<2x8x8xf32>
    %30 = arith.subf %26, %29 : vector<2x8x8xf32>
    %31 = math.exp %30 : vector<2x8x8xf32>
    %cst_13 = arith.constant dense<0.000000e+00> : vector<2x8xf32>
    %32 = vector.multi_reduction <add>, %31, %cst_13 [2] : vector<2x8x8xf32> to vector<2x8xf32>
    %33 = vector.shape_cast %32 : vector<2x8xf32> to vector<2x8x1xf32>
    %34 = vector.broadcast %33 : vector<2x8x1xf32> to vector<2x8x8xf32>
    %35 = arith.divf %31, %34 : vector<2x8x8xf32>
    "tpu.trace_start"() <{level = 10 : i32, message = "bqk,bkd->bqd"}> : () -> ()
    %cst_14 = arith.constant dense<0.000000e+00> : vector<2x8x8xf32>
    %36 = tpu.matmul %35, %25, %cst_14 {dimension_numbers = #tpu.dot_dimension_numbers<[2], [1], [1], [2], [0, 0, 0, 1, 1, 2], [0], [0]>} : vector<2x8x8xf32>, vector<2x8x8xf32>, vector<2x8x8xf32> -> vector<2x8x8xf32>
    "tpu.trace_stop"() : () -> ()
    %37 = vector.shape_cast %36 : vector<2x8x8xf32> to vector<16x8xf32>
    %c0_15 = arith.constant 0 : index
    %c8 = arith.constant 8 : index
    %38 = vector.load %arg7[%c0_15, %c8] : memref<16x32xf32, #tpu.memory_space<vmem>>, vector<16x8xf32>
    tpu.vector_store %arg7[%c0_15, %c8], %37 {strides = array<i32>} : memref<16x32xf32, #tpu.memory_space<vmem>>, vector<16x8xf32>,
    %39 = vector.extract_strided_slice %6 {offsets = [0, 0, 48], sizes = [2, 8, 8], strides = [1, 1, 1]} : vector<2x8x96xf32> to vector<2x8x8xf32>
    %40 = vector.extract_strided_slice %6 {offsets = [0, 0, 56], sizes = [2, 8, 8], strides = [1, 1, 1]} : vector<2x8x96xf32> to vector<2x8x8xf32>
    %41 = vector.extract_strided_slice %6 {offsets = [0, 0, 64], sizes = [2, 8, 8], strides = [1, 1, 1]} : vector<2x8x96xf32> to vector<2x8x8xf32>
    "tpu.trace_start"() <{level = 10 : i32, message = "bqd,bkd->bqk"}> : () -> ()
    %cst_16 = arith.constant dense<0.000000e+00> : vector<2x8x8xf32>
    %42 = tpu.matmul %39, %40, %cst_16 {dimension_numbers = #tpu.dot_dimension_numbers<[2], [2], [1], [1], [0, 0, 0, 1, 1, 1], [0], [0]>} : vector<2x8x8xf32>, vector<2x8x8xf32>, vector<2x8x8xf32> -> vector<2x8x8xf32>
    "tpu.trace_stop"() : () -> ()
    %cst_17 = arith.constant dense<0xFF800000> : vector<2x8xf32>
    %43 = vector.multi_reduction <maximumf>, %42, %cst_17 [2] : vector<2x8x8xf32> to vector<2x8xf32>
    %44 = vector.shape_cast %43 : vector<2x8xf32> to vector<2x8x1xf32>
    %45 = vector.broadcast %44 : vector<2x8x1xf32> to vector<2x8x8xf32>
    %46 = arith.subf %42, %45 : vector<2x8x8xf32>
    %47 = math.exp %46 : vector<2x8x8xf32>
    %cst_18 = arith.constant dense<0.000000e+00> : vector<2x8xf32>
    %48 = vector.multi_reduction <add>, %47, %cst_18 [2] : vector<2x8x8xf32> to vector<2x8xf32>
    %49 = vector.shape_cast %48 : vector<2x8xf32> to vector<2x8x1xf32>
    %50 = vector.broadcast %49 : vector<2x8x1xf32> to vector<2x8x8xf32>
    %51 = arith.divf %47, %50 : vector<2x8x8xf32>
    "tpu.trace_start"() <{level = 10 : i32, message = "bqk,bkd->bqd"}> : () -> ()
    %cst_19 = arith.constant dense<0.000000e+00> : vector<2x8x8xf32>
    %52 = tpu.matmul %51, %41, %cst_19 {dimension_numbers = #tpu.dot_dimension_numbers<[2], [1], [1], [2], [0, 0, 0, 1, 1, 2], [0], [0]>} : vector<2x8x8xf32>, vector<2x8x8xf32>, vector<2x8x8xf32> -> vector<2x8x8xf32>
    "tpu.trace_stop"() : () -> ()
    %53 = vector.shape_cast %52 : vector<2x8x8xf32> to vector<16x8xf32>
    %c0_20 = arith.constant 0 : index
    %c16 = arith.constant 16 : index
    %54 = vector.load %arg7[%c0_20, %c16] : memref<16x32xf32, #tpu.memory_space<vmem>>, vector<16x8xf32>
    tpu.vector_store %arg7[%c0_20, %c16], %53 {strides = array<i32>} : memref<16x32xf32, #tpu.memory_space<vmem>>, vector<16x8xf32>,
    %55 = vector.extract_strided_slice %6 {offsets = [0, 0, 72], sizes = [2, 8, 8], strides = [1, 1, 1]} : vector<2x8x96xf32> to vector<2x8x8xf32>
    %56 = vector.extract_strided_slice %6 {offsets = [0, 0, 80], sizes = [2, 8, 8], strides = [1, 1, 1]} : vector<2x8x96xf32> to vector<2x8x8xf32>
    %57 = vector.extract_strided_slice %6 {offsets = [0, 0, 88], sizes = [2, 8, 8], strides = [1, 1, 1]} : vector<2x8x96xf32> to vector<2x8x8xf32>
    "tpu.trace_start"() <{level = 10 : i32, message = "bqd,bkd->bqk"}> : () -> ()
    %cst_21 = arith.constant dense<0.000000e+00> : vector<2x8x8xf32>
    %58 = tpu.matmul %55, %56, %cst_21 {dimension_numbers = #tpu.dot_dimension_numbers<[2], [2], [1], [1], [0, 0, 0, 1, 1, 1], [0], [0]>} : vector<2x8x8xf32>, vector<2x8x8xf32>, vector<2x8x8xf32> -> vector<2x8x8xf32>
    "tpu.trace_stop"() : () -> ()
    %cst_22 = arith.constant dense<0xFF800000> : vector<2x8xf32>
    %59 = vector.multi_reduction <maximumf>, %58, %cst_22 [2] : vector<2x8x8xf32> to vector<2x8xf32>
    %60 = vector.shape_cast %59 : vector<2x8xf32> to vector<2x8x1xf32>
    %61 = vector.broadcast %60 : vector<2x8x1xf32> to vector<2x8x8xf32>
    %62 = arith.subf %58, %61 : vector<2x8x8xf32>
    %63 = math.exp %62 : vector<2x8x8xf32>
    %cst_23 = arith.constant dense<0.000000e+00> : vector<2x8xf32>
    %64 = vector.multi_reduction <add>, %63, %cst_23 [2] : vector<2x8x8xf32> to vector<2x8xf32>
    %65 = vector.shape_cast %64 : vector<2x8xf32> to vector<2x8x1xf32>
    %66 = vector.broadcast %65 : vector<2x8x1xf32> to vector<2x8x8xf32>
    %67 = arith.divf %63, %66 : vector<2x8x8xf32>
    "tpu.trace_start"() <{level = 10 : i32, message = "bqk,bkd->bqd"}> : () -> ()
    %cst_24 = arith.constant dense<0.000000e+00> : vector<2x8x8xf32>
    %68 = tpu.matmul %67, %57, %cst_24 {dimension_numbers = #tpu.dot_dimension_numbers<[2], [1], [1], [2], [0, 0, 0, 1, 1, 2], [0], [0]>} : vector<2x8x8xf32>, vector<2x8x8xf32>, vector<2x8x8xf32> -> vector<2x8x8xf32>
    "tpu.trace_stop"() : () -> ()
    %69 = vector.shape_cast %68 : vector<2x8x8xf32> to vector<16x8xf32>
    %c0_25 = arith.constant 0 : index
    %c24 = arith.constant 24 : index
    %70 = vector.load %arg7[%c0_25, %c24] : memref<16x32xf32, #tpu.memory_space<vmem>>, vector<16x8xf32>
    tpu.vector_store %arg7[%c0_25, %c24], %69 {strides = array<i32>} : memref<16x32xf32, #tpu.memory_space<vmem>>, vector<16x8xf32>,
    %c0_26 = arith.constant 0 : index
    %c0_27 = arith.constant 0 : index
    %71 = vector.load %arg7[%c0_26, %c0_27] : memref<16x32xf32, #tpu.memory_space<vmem>>, vector<16x32xf32>
    %c0_28 = arith.constant 0 : index
    %c0_29 = arith.constant 0 : index
    %72 = vector.load %arg4[%c0_28, %c0_29] : memref<32x32xf32, #tpu.memory_space<vmem>>, vector<32x32xf32>
    %cst_30 = arith.constant dense<0.000000e+00> : vector<16x32xf32>
    %73 = tpu.matmul %71, %72, %cst_30 {dimension_numbers = #tpu.dot_dimension_numbers<[1], [0], [0], [1], [0, 0, 1, 1], [], []>} : vector<16x32xf32>, vector<32x32xf32>, vector<16x32xf32> -> vector<16x32xf32>
    %c0_31 = arith.constant 0 : index
    %c0_32 = arith.constant 0 : index
    %74 = vector.load %arg5[%c0_31, %c0_32] : memref<1x32xf32, #tpu.memory_space<vmem>>, vector<1x32xf32>
    %75 = vector.broadcast %74 : vector<1x32xf32> to vector<16x32xf32>
    %76 = arith.addf %73, %75 : vector<16x32xf32>
    %c0_33 = arith.constant 0 : index
    %c0_34 = arith.constant 0 : index
    %77 = vector.load %arg6[%c0_33, %c0_34] : memref<16x32xf32, #tpu.memory_space<vmem>>, vector<16x32xf32>
    tpu.vector_store %arg6[%c0_33, %c0_34], %76 {strides = array<i32>} : memref<16x32xf32, #tpu.memory_space<vmem>>, vector<16x32xf32>,
    return
  }
  func.func @transform_0(%arg0: i32) -> (i32, i32) {
    %c0_i32 = arith.constant 0 : i32
    %c0_i32_0 = arith.constant 0 : i32
    %c0_i32_1 = arith.constant 0 : i32
    return %c0_i32, %c0_i32_0 : i32, i32
  }
  func.func @transform_1(%arg0: i32) -> (i32, i32) {
    %c0_i32 = arith.constant 0 : i32
    %c0_i32_0 = arith.constant 0 : i32
    %c0_i32_1 = arith.constant 0 : i32
    return %c0_i32, %c0_i32_0 : i32, i32
  }
  func.func @transform_2(%arg0: i32) -> (i32, i32) {
    %c0_i32 = arith.constant 0 : i32
    %c0_i32_0 = arith.constant 0 : i32
    %c0_i32_1 = arith.constant 0 : i32
    return %c0_i32, %c0_i32_0 : i32, i32
  }
  func.func @transform_3(%arg0: i32) -> (i32, i32) {
    %c0_i32 = arith.constant 0 : i32
    %c0_i32_0 = arith.constant 0 : i32
    %c0_i32_1 = arith.constant 0 : i32
    return %c0_i32, %c0_i32_0 : i32, i32
  }
  func.func @transform_4(%arg0: i32) -> (i32, i32) {
    %c0_i32 = arith.constant 0 : i32
    %c0_i32_0 = arith.constant 0 : i32
    %c0_i32_1 = arith.constant 0 : i32
    return %c0_i32, %c0_i32_0 : i32, i32
  }
  func.func @transform_5(%arg0: i32) -> (i32, i32) {
    %c0_i32 = arith.constant 0 : i32
    %c0_i32_0 = arith.constant 0 : i32
    %c0_i32_1 = arith.constant 0 : i32
    return %c0_i32, %c0_i32_0 : i32, i32
  }
}

</mosaic_0001>

<bundles_post_ra>
// kernel: tpu_custom_call.1
= control target key start
LH: loop header
LB: loop body
LE: loop exit
PB: predicated region body
PF: predicated region fallthrough
CT: control target
= control target key end

     0   :  { %10 = vsyncpa [#allocation4], 0  ;;  %s1210_s0 = inlined_call_operand.hbm [shape: f32[16,32], index: 0, kind: input, shape index: {}]   ;;  %s1211_s1 = inlined_call_operand.hbm [shape: f32[32,96], index: 1, kind: input, shape index: {}]   ;;  %s1212_s2 = inlined_call_operand.vmem [shape: f32[1,96], index: 2, kind: input, shape index: {}]   ;;  %s1213_s3 = inlined_call_operand.hbm [shape: f32[32,32], index: 3, kind: input, shape index: {}]   ;;  %s1214_s4 = inlined_call_operand.vmem [shape: f32[1,32], index: 4, kind: input, shape index: {}]   ;;  %s1215_s5 = inlined_call_operand.hbm [shape: f32[16,32], index: 5, kind: output, shape index: {}]  }
   0x1   :  { %11 = vsyncpa [#allocation7], 0 }
   0x2   :  { %12 = vsyncpa [#allocation5], 0  ;;  %s30_s20 = sshll.u32 %s1211_s1, 4  ;;  %s1015_s21 = smov [#allocation6]   ;;  %s31_s20 = int_to_ptr.hbm [resolvable:$true] %s30_s20 }
   0x3   :  { %s32_s22 = sshll.u32 %s1015_s21, 4  ;;  %s17_s25 = sshll.u32 %s1210_s0, 4  ;;  %s33_s22 = int_to_ptr.vmem [resolvable:$true] %s32_s22  ;;  %s18_s25 = int_to_ptr.hbm [resolvable:$true] %s17_s25 }
   0x4   :  { %s1016_s26 = smov 128   ;;  %s1017_s27 = smov 8  }
   0x5   :  { %38 = dma.hbm_to_vmem [thread:$0]  %s31_s20, 512, %s33_s22, [#allocation7], %s1016_s26, %s1016_s26, %s1017_s27  }
   0x6   :  { %s1018_s28 = smov [#allocation3]   ;;  %s45_s1 = sshll.u32 %s1213_s3, 4  ;;  %s46_s1 = int_to_ptr.hbm [resolvable:$true] %s45_s1 }
   0x7   :  { %s19_s29 = sshll.u32 %s1018_s28, 4  ;;  %s1019_s0 = smov [#allocation8]   ;;  %s20_s29 = int_to_ptr.vmem [resolvable:$true] %s19_s29 }
   0x8   :  { %25 = dma.hbm_to_vmem [thread:$0]  %s18_s25, 256, %s20_s29, [#allocation4], %s1016_s26, %s1016_s26, %s1017_s27  }
   0x9   :  { %s47_s7 = sshll.u32 %s1019_s0, 4  ;;  %s48_s7 = int_to_ptr.vmem [resolvable:$true] %s47_s7 }
   0xa   :  { %53 = dma.hbm_to_vmem [thread:$0]  %s46_s1, 512, %s48_s7, [#allocation7], %s1016_s26, %s1016_s26, %s1017_s27  }
   0xb   :  { %1009 = dma.done.wait [#allocation4], 256  }
   0xc   :  { %1010 = vsyncadd [#allocation4], 4294967040 }
   0xd   :  { %1011 = dma.done.wait [#allocation7], 1024  }
   0xe   :  { %1012 = vsyncadd [#allocation7], 4294966272  ;;  %v73_v0 = vld [vmem:[#allocation6 + $0x18] sm:$0xff]  ;;  %v72_v1 = vld [vmem:[#allocation6 + $0x10] sm:$0xff]  ;;  %vm78_vm0 = vcmask 261120   ;;  %s1020_s9 = smov 96  }
   0xf   :  { %97 = vmatpush.msra.mxu0 %v73_v0  ;;  %v71_v2 = vld [vmem:[#allocation6 + $0x8] sm:$0xff]  ;;  %v70_v3 = vld [vmem:[#allocation6] sm:$0xff]  ;;  %v68_v4 = vld [vmem:[#allocation3] sm:$0xff]  ;;  %s1021_s10 = smov 120   ;;  %s1022_s11 = smov 72   ;;  %vm111_vm1 = vcmask 64512  }
  0x10   :  { %v69_v5 = vld [vmem:[#allocation3 + $0x8] sm:$0xff]  ;;  %v879_v6 = vld [vmem:[%s1212_s2] ss:$0 sm:$0xff]  ;;  %s1023_s2 = smov 104   ;;  %s1024_s12 = smov 48  }
  0x11   :  { %98 = vmatpush.msra.mxu0 %v72_v1  ;;  %s1025_s13 = smov 80   ;;  %s1026_s14 = smov 56  }
  0x12   :  { %s1027_s15 = smov 112   ;;  %s1028_s16 = smov 88  }
  0x13   :  { %99 = vmatpush.msra.mxu0 %v71_v2  ;;  %s1029_s17 = smov 64   ;;  %s1030_s18 = smov 40  }
  0x14   :  { %s1031_s19 = smov 16   ;;  %s1032_s20 = smov 24  }
  0x15   :  { %100 = vmatpush.msra.mxu0 %v70_v3  ;;  %s1033_s23 = smov [#allocation9]   ;;  %s813_s29 = sshll.u32 %s1215_s5, 4  ;;  %s814_s29 = int_to_ptr.hbm [resolvable:$true] %s813_s29 }
  0x16   :  { %827 = vmatmul.msk.f32.vlgmr.msra.gmra.mxu0 %vm78_vm0, %v68_v4  ;;  %s811_s24 = sshll.u32 %s1033_s23, 4  ;;  %s812_s24 = int_to_ptr.vmem [resolvable:$true] %s811_s24 }
  0x1e   :  { %828 = vmatmul.msk.f32.gmra.mxu0 %vm78_vm0, %v69_v5 }
  0x93   :  { %v102_v7 = vpop.f32.mrf.mxu0 }
  0x94   :  { %v1087_v8 = vadd.f32 %v879_v6, %v102_v7 }
  0x96   :  { %267 = vrot.lane.b32.xlu2 %v1087_v8, %s1020_s9  ;;  %109 = vrot.lane.b32.xlu0 %v1087_v8, %s1021_s10 }
  0x9b   :  { %v105_v9 = vpop.f32.mrf.mxu0 }
  0x9c   :  { %v1091_v10 = vadd.f32 %v879_v6, %v105_v9 }
  0x9e   :  { %295 = vrot.lane.b32.xlu1 %v1091_v10, %s1020_s9  ;;  %434 = vrot.lane.b32.xlu2 %v1087_v8, %s1022_s11  ;;  %v874_v41 = vpack.i.bf16 %v1091_v10, %v1087_v8 }
  0x9f   :  { %137 = vrot.lane.b32.xlu0 %v1091_v10, %s1021_s10 }
  0xa6   :  { %293 = vrot.lane.b32.xlu1 %v1091_v10, %s1023_s2  ;;  %601 = vrot.lane.b32.xlu2 %v1087_v8, %s1024_s12 }
  0xa7   :  { %265 = vrot.lane.b32.xlu0 %v1087_v8, %s1023_s2 }
  0xae   :  { %432 = vrot.lane.b32.xlu1 %v1087_v8, %s1025_s13  ;;  %460 = vrot.lane.b32.xlu2 %v1091_v10, %s1025_s13 }
  0xaf   :  { %599 = vrot.lane.b32.xlu0 %v1087_v8, %s1026_s14 }
  0xb6   :  { %462 = vrot.lane.b32.xlu1 %v1091_v10, %s1022_s11 }
  0xb7   :  { %629 = vrot.lane.b32.xlu0 %v1091_v10, %s1024_s12 }
  0xbe   :  { %627 = vrot.lane.b32.xlu1 %v1091_v10, %s1026_s14 }
  0xf0   :  { %v268_v11 = vpop.permute.xlu2 %267 }
  0xf8   :  { %v435_v13 = vpop.permute.xlu2 %434 }
 0x100   :  { %v602_v17 = vpop.permute.xlu2 %601 }
 0x108   :  { %v110_v12 = vpop.permute.xlu0 %109  ;;  %v461_v23 = vpop.permute.xlu2 %460 }
 0x109   :  { %829 = vmatpush.xpose.msk.msra.mxu1 %vm111_vm1, %v110_v12 }
 0x10c   :  { %830 = vmatmul.msk.f32.vlgmr.msra.gmra.mxu1 %vm111_vm1, %v1087_v8 }
 0x10d   :  { %835 = vmatpush.xpose.msk.msrb.mxu1 %vm111_vm1, %v268_v11 }
 0x110   :  { %v296_v14 = vpop.permute.xlu1 %295 }
 0x111   :  { %v138_v15 = vpop.permute.xlu0 %137  ;;  %837 = vmatpush.xpose.msk.msra.mxu2 %vm111_vm1, %v296_v14 }
 0x112   :  { %831 = vmatpush.xpose.msk.msrb.mxu0 %vm111_vm1, %v138_v15 }
 0x115   :  { %841 = vmatpush.xpose.msk.msrb.mxu2 %vm111_vm1, %v435_v13  ;;  %832 = vmatmul.msk.f32.vlgmr.msrb.gmra.mxu0 %vm111_vm1, %v1091_v10 }
 0x118   :  { %v294_v16 = vpop.permute.xlu1 %293 }
 0x119   :  { %v266_v18 = vpop.permute.xlu0 %265  ;;  %838 = vmatmul.msk.f32.vlgmr.msra.gmra.mxu2 %vm111_vm1, %v294_v16 }
 0x11a   :  { %836 = vmatmul.msk.f32.vlgmr.msrb.gmra.mxu1 %vm111_vm1, %v266_v18  ;;  %847 = vmatpush.xpose.msk.msra.mxu2 %vm111_vm1, %v602_v17 }
 0x120   :  { %v433_v19 = vpop.permute.xlu1 %432 }
 0x121   :  { %v600_v20 = vpop.permute.xlu0 %599  ;;  %842 = vmatmul.msk.f32.vlgmr.msrb.gmra.mxu2 %vm111_vm1, %v433_v19 }
 0x128   :  { %v463_v21 = vpop.permute.xlu1 %462 }
 0x129   :  { %v630_v22 = vpop.permute.xlu0 %629  ;;  %843 = vmatpush.xpose.msk.msra.mxu0 %vm111_vm1, %v463_v21  ;;  %848 = vmatmul.msk.f32.vlgmr.msra.gmra.mxu2 %vm111_vm1, %v600_v20 }
 0x12c   :  { %844 = vmatmul.msk.f32.vlgmr.msra.gmra.mxu0 %vm111_vm1, %v461_v23 }
 0x12d   :  { %849 = vmatpush.xpose.msk.msrb.mxu0 %vm111_vm1, %v630_v22 }
 0x130   :  { %v628_v24 = vpop.permute.xlu1 %627 }
 0x134   :  { %850 = vmatmul.msk.f32.vlgmr.msrb.gmra.mxu0 %vm111_vm1, %v628_v24 }
 0x189   :  { %v133_v25 = vpop.f32.mrf.mxu1 }
 0x18a   :  { %v163_v26 = vsel %vm111_vm1, %v133_v25, -inf }
 0x18b   :  { %164 = vmax.xlane.f32.xlu2 %v163_v26 }
 0x192   :  { %v160_v27 = vpop.f32.mrf.mxu0 }
 0x193   :  { %v166_v28 = vsel %vm111_vm1, %v160_v27, -inf }
 0x194   :  { %167 = vmax.xlane.f32.xlu0 %v166_v28 }
 0x197   :  { %v290_v29 = vpop.f32.mrf.mxu1 }
 0x198   :  { %v321_v30 = vsel %vm111_vm1, %v290_v29, -inf }
 0x199   :  { %322 = vmax.xlane.f32.xlu1 %v321_v30 }
 0x19c   :  { %v318_v31 = vpop.f32.mrf.mxu2 }
 0x19d   :  { %v324_v32 = vsel %vm111_vm1, %v318_v31, -inf }
 0x19e   :  { %325 = vmax.xlane.f32.xlu2 %v324_v32 }
 0x1a4   :  { %v457_v33 = vpop.f32.mrf.mxu2 }
 0x1a5   :  { %v488_v34 = vsel %vm111_vm1, %v457_v33, -inf }
 0x1a6   :  { %489 = vmax.xlane.f32.xlu2 %v488_v34 }
 0x1a9   :  { %v485_v35 = vpop.f32.mrf.mxu0 }
 0x1aa   :  { %v491_v36 = vsel %vm111_vm1, %v485_v35, -inf }
 0x1ab   :  { %492 = vmax.xlane.f32.xlu1 %v491_v36 }
 0x1ac   :  { %v1129_v37 = vpop.f32.mrf.mxu2 }
 0x1ad   :  { %v655_v38 = vsel %vm111_vm1, %v1129_v37, -inf }
 0x1ae   :  { %656 = vmax.xlane.f32.xlu0 %v655_v38 }
 0x1b1   :  { %v652_v39 = vpop.f32.mrf.mxu0 }
 0x1b2   :  { %v658_v40 = vsel %vm111_vm1, %v652_v39, -inf }
 0x1b3   :  { %659 = vmax.xlane.f32.xlu2 %v658_v40 }
 0x1c2   :  { %875 = vrot.lane.b32.xlu0 %v874_v41, %s1027_s15 }
 0x1cb   :  { %369 = vrot.lane.b32.xlu2 %v1087_v8, %s1028_s16 }
 0x1fe   :  { %v165_v42 = vpop.xlane.xlu2 %164 }
 0x1ff   :  { %v169_v43 = vsub.f32 %v133_v25, %v165_v42 }
 0x201   :  { %v171_v44 = vmul.f32 1.442695, %v169_v43 }
 0x203   :  { %881 = vpow2.f32 %v171_v44 }
 0x207   :  { %v168_v45 = vpop.xlane.xlu0 %167 }
 0x208   :  { %v170_v46 = vsub.f32 %v160_v27, %v168_v45 }
 0x209   :  { %v1138_v47 = vpop.eup %881 }
 0x20a   :  { %v173_v48 = vmul.f32 1.442695, %v170_v46  ;;  %v175_v49 = vsel %vm111_vm1, %v1138_v47, 0.0 }
 0x20b   :  { %176 = vadd.xlane.f32.xlu0 %v175_v49 }
 0x20c   :  { %883 = vpow2.f32 %v173_v48  ;;  %v323_v50 = vpop.xlane.xlu1 %322 }
 0x20d   :  { %v327_v51 = vsub.f32 %v290_v29, %v323_v50 }
 0x20f   :  { %v329_v52 = vmul.f32 1.442695, %v327_v51 }
 0x211   :  { %885 = vpow2.f32 %v329_v52  ;;  %v326_v53 = vpop.xlane.xlu2 %325 }
 0x212   :  { %v1142_v54 = vpop.eup %883  ;;  %v328_v55 = vsub.f32 %v318_v31, %v326_v53 }
 0x213   :  { %v178_v56 = vsel %vm111_vm1, %v1142_v54, 0.0 }
 0x214   :  { %v331_v57 = vmul.f32 1.442695, %v328_v55  ;;  %179 = vadd.xlane.f32.xlu1 %v178_v56 }
 0x216   :  { %887 = vpow2.f32 %v331_v57 }
 0x217   :  { %v1146_v58 = vpop.eup %885 }
 0x218   :  { %v333_v59 = vsel %vm111_vm1, %v1146_v58, 0.0 }
 0x219   :  { %334 = vadd.xlane.f32.xlu2 %v333_v59  ;;  %v490_v61 = vpop.xlane.xlu2 %489 }
 0x21a   :  { %v494_v1 = vsub.f32 %v457_v33, %v490_v61 }
 0x21c   :  { %v1150_v60 = vpop.eup %887  ;;  %v496_v3 = vmul.f32 1.442695, %v494_v1 }
 0x21d   :  { %v336_v0 = vsel %vm111_vm1, %v1150_v60, 0.0 }
 0x21e   :  { %v493_v62 = vpop.xlane.xlu1 %492 }
 0x21f   :  { %v495_v63 = vsub.f32 %v485_v35, %v493_v62  ;;  %536 = vrot.lane.b32.xlu0 %v1087_v8, %s1029_s17 }
 0x221   :  { %v498_v2 = vmul.f32 1.442695, %v495_v63  ;;  %337 = vadd.xlane.f32.xlu2 %v336_v0  ;;  %v657_v9 = vpop.xlane.xlu0 %656 }
 0x222   :  { %v661_v13 = vsub.f32 %v1129_v37, %v657_v9 }
 0x223   :  { %889 = vpow2.f32 %v498_v2 }
 0x224   :  { %891 = vpow2.f32 %v496_v3  ;;  %v663_v16 = vmul.f32 1.442695, %v661_v13 }
 0x226   :  { %v660_v4 = vpop.xlane.xlu2 %659 }
 0x227   :  { %395 = vrot.lane.b32.xlu0 %v1091_v10, %s1028_s16  ;;  %v662_v6 = vsub.f32 %v652_v39, %v660_v4 }
 0x229   :  { %v1157_v5 = vpop.eup %889  ;;  %v665_v11 = vmul.f32 1.442695, %v662_v6 }
 0x22a   :  { %v503_v7 = vsel %vm111_vm1, %v1157_v5, 0.0  ;;  %v1161_v12 = vpop.eup %891 }
 0x22b   :  { %504 = vadd.xlane.f32.xlu1 %v503_v7  ;;  %893 = vpow2.f32 %v665_v11  ;;  %v500_v14 = vsel %vm111_vm1, %v1161_v12, 0.0 }
 0x22c   :  { %895 = vpow2.f32 %v663_v16 }
 0x22e   :  { %v370_v24 = vpop.permute.xlu2 %369 }
 0x22f   :  { %562 = vrot.lane.b32.xlu0 %v1091_v10, %s1029_s17 }
 0x231   :  { %v1167_v19 = vpop.eup %893 }
 0x232   :  { %v670_v20 = vsel %vm111_vm1, %v1167_v19, 0.0  ;;  %v1172_v21 = vpop.eup %895 }
 0x233   :  { %501 = vadd.xlane.f32.xlu1 %v500_v14  ;;  %v667_v22 = vsel %vm111_vm1, %v1172_v21, 0.0 }
 0x234   :  { %v876_v15 = vpop.permute.xlu0 %875 }
 0x235   :  { %v877_v17 = vunpack.i.l.bf16 %v876_v15  ;;  %v878_v18 = vunpack.i.h.bf16 %v876_v15 }
 0x237   :  { %232 = vmatpush.msra.mxu3 %v877_v17 }
 0x239   :  { %258 = vmatpush.msrb.mxu3 %v878_v18  ;;  %729 = vrot.lane.b32.xlu2 %v1091_v10, %s1030_s18 }
 0x23b   :  { %671 = vadd.xlane.f32.xlu1 %v670_v20 }
 0x243   :  { %668 = vadd.xlane.f32.xlu1 %v667_v22 }
 0x25c   :  { %703 = vrot.lane.b32.xlu1 %v1087_v8, %s1030_s18 }
 0x27e   :  { %v177_v23 = vpop.xlane.xlu0 %176 }
 0x27f   :  { %897 = vrcp.f32 %v177_v23  ;;  %v192_v29 = vand.u32 2147483648, %v177_v23  ;;  %v190_v30 = vand.u32 2147483647, %v177_v23  ;;  %vm186_vm3 = vweird.f32 %v177_v23 }
 0x281   :  { %v193_v34 = vor.u32 1.1754944e-38, %v192_v29  ;;  %vm191_vm5 = vcmp.eq.f32.partialorder %v190_v30, 8.507059e+37 }
 0x285   :  { %v898_v25 = vpop.eup %897 }
 0x286   :  { %v182_v26 = vmul.f32 %v898_v25, %v177_v23  ;;  %vm187_vm2 = vweird.f32 %v898_v25 }
 0x287   :  { %v180_v27 = vpop.xlane.xlu1 %179  ;;  %vm188_vm4 = vmor %vm186_vm3, %vm187_vm2 }
 0x288   :  { %v183_v28 = vsub.f32 1.0, %v182_v26  ;;  %899 = vrcp.f32 %v180_v27  ;;  %v207_v40 = vand.u32 2147483648, %v180_v27  ;;  %v205_v43 = vand.u32 2147483647, %v180_v27 }
 0x289   :  { %vm201_vm7 = vweird.f32 %v180_v27 }
 0x28a   :  { %v184_v10 = vmul.f32 %v898_v25, %v183_v28  ;;  %v208_v48 = vor.u32 1.1754944e-38, %v207_v40  ;;  %vm206_vm9 = vcmp.eq.f32.partialorder %v205_v43, 8.507059e+37 }
 0x28c   :  { %v335_v31 = vpop.xlane.xlu2 %334  ;;  %v185_v32 = vadd.f32 %v898_v25, %v184_v10 }
 0x28d   :  { %901 = vrcp.f32 %v335_v31  ;;  %v348_v53 = vand.u32 2147483647, %v335_v31  ;;  %vm344_vm11 = vweird.f32 %v335_v31 }
 0x28e   :  { %v900_v33 = vpop.eup %899  ;;  %v189_v8 = vsel %vm188_vm4, %v898_v25, %v185_v32 }
 0x28f   :  { %v197_v35 = vmul.f32 %v900_v33, %v180_v27  ;;  %v194_v36 = vsel %vm191_vm5, %v193_v34, %v189_v8  ;;  %vm202_vm6 = vweird.f32 %v900_v33  ;;  %vm349_vm13 = vcmp.eq.f32.partialorder %v348_v53, 8.507059e+37 }
 0x290   :  { %v195_v39 = vmul.f32 %v1138_v47, %v194_v36  ;;  %vm203_vm8 = vmor %vm201_vm7, %vm202_vm6  ;;  %v350_v47 = vand.u32 2147483648, %v335_v31 }
 0x291   :  { %v198_v37 = vsub.f32 1.0, %v197_v35  ;;  %v537_v38 = vpop.permute.xlu0 %536 }
 0x292   :  { %833 = vmatmul.msk.f32.vlgmr.msra.gmra.mxu3 %vm111_vm1, %v195_v39  ;;  %v351_v62 = vor.u32 1.1754944e-38, %v350_v47 }
 0x293   :  { %v902_v41 = vpop.eup %901  ;;  %v199_v42 = vmul.f32 %v900_v33, %v198_v37  ;;  %390 = vmatpush.msra.mxu3 %v370_v24 }
 0x294   :  { %v340_v44 = vmul.f32 %v902_v41, %v335_v31  ;;  %v338_v45 = vpop.xlane.xlu2 %337  ;;  %vm345_vm10 = vweird.f32 %v902_v41 }
 0x295   :  { %v200_v46 = vadd.f32 %v900_v33, %v199_v42  ;;  %903 = vrcp.f32 %v338_v45  ;;  %vm346_vm12 = vmor %vm344_vm11, %vm345_vm10  ;;  %v365_v3 = vand.u32 2147483648, %v338_v45  ;;  %vm359_vm15 = vweird.f32 %v338_v45 }
 0x296   :  { %v341_v49 = vsub.f32 1.0, %v340_v44 }
 0x297   :  { %v204_v50 = vsel %vm203_vm8, %v900_v33, %v200_v46  ;;  %v366_v11 = vor.u32 1.1754944e-38, %v365_v3 }
 0x298   :  { %v342_v51 = vmul.f32 %v902_v41, %v341_v49  ;;  %v209_v52 = vsel %vm206_vm9, %v208_v48, %v204_v50 }
 0x299   :  { %v396_v55 = vpop.permute.xlu0 %395  ;;  %v210_v56 = vmul.f32 %v1142_v54, %v209_v52  ;;  %v363_v54 = vand.u32 2147483647, %v338_v45 }
 0x29a   :  { %v343_v57 = vadd.f32 %v902_v41, %v342_v51  ;;  %416 = vmatpush.msra.mxu1 %v396_v55 }
 0x29b   :  { %v904_v59 = vpop.eup %903  ;;  %834 = vmatmul.msk.f32.vlgmr.msrb.gmra.mxu3 %vm111_vm1, %v210_v56  ;;  %vm364_vm3 = vcmp.eq.f32.partialorder %v363_v54, 8.507059e+37 }
 0x29c   :  { %v347_v61 = vsel %vm346_vm12, %v902_v41, %v343_v57  ;;  %v355_v63 = vmul.f32 %v904_v59, %v338_v45  ;;  %557 = vmatpush.msrb.mxu3 %v537_v38  ;;  %vm360_vm14 = vweird.f32 %v904_v59  ;;  %v730_v20 = vpop.permute.xlu2 %729 }
 0x29d   :  { %v352_v0 = vsel %vm349_vm13, %v351_v62, %v347_v61  ;;  %vm361_vm2 = vmor %vm359_vm15, %vm360_vm14 }
 0x29e   :  { %v356_v1 = vsub.f32 1.0, %v355_v63  ;;  %v505_v2 = vpop.xlane.xlu1 %504  ;;  %v353_v7 = vmul.f32 %v1146_v58, %v352_v0 }
 0x29f   :  { %905 = vrcp.f32 %v505_v2  ;;  %v532_v58 = vand.u32 2147483648, %v505_v2  ;;  %v530_v24 = vand.u32 2147483647, %v505_v2  ;;  %vm526_vm5 = vweird.f32 %v505_v2 }
 0x2a0   :  { %v357_v4 = vmul.f32 %v904_v59, %v356_v1 }
 0x2a1   :  { %v563_v6 = vpop.permute.xlu0 %562  ;;  %v533_v27 = vor.u32 1.1754944e-38, %v532_v58  ;;  %vm531_vm7 = vcmp.eq.f32.partialorder %v530_v24, 8.507059e+37  ;;  %v880_v58 = vld [vmem:[%s1214_s4] ss:$0 sm:$0xff] }
 0x2a2   :  { %v358_v9 = vadd.f32 %v904_v59, %v357_v4  ;;  %583 = vmatpush.msrb.mxu1 %v563_v6 }
 0x2a3   :  { %839 = vmatmul.msk.f32.vlgmr.msra.gmra.mxu3 %vm111_vm1, %v353_v7 }
 0x2a4   :  { %v362_v13 = vsel %vm361_vm2, %v904_v59, %v358_v9 }
 0x2a5   :  { %v906_v14 = vpop.eup %905  ;;  %v367_v15 = vsel %vm364_vm3, %v366_v11, %v362_v13  ;;  %v771_v13 = vld [vmem:[#allocation8 + $0x18] sm:$0xff] }
 0x2a6   :  { %v522_v16 = vmul.f32 %v906_v14, %v505_v2  ;;  %v502_v17 = vpop.xlane.xlu1 %501  ;;  %v368_v18 = vmul.f32 %v1150_v60, %v367_v15  ;;  %vm527_vm4 = vweird.f32 %v906_v14  ;;  %794 = vmatpush.msrb.mxu2 %v771_v13  ;;  %v769_v15 = vld [vmem:[#allocation8 + $0x8] sm:$0xff] }
 0x2a7   :  { %907 = vrcp.f32 %v502_v17  ;;  %vm528_vm6 = vmor %vm526_vm5, %vm527_vm4  ;;  %v517_v32 = vand.u32 2147483648, %v502_v17  ;;  %v515_v34 = vand.u32 2147483647, %v502_v17  ;;  %vm511_vm9 = vweird.f32 %v502_v17 }
 0x2a8   :  { %v523_v22 = vsub.f32 1.0, %v522_v16  ;;  %840 = vmatmul.msk.f32.vlgmr.msra.gmra.mxu1 %vm111_vm1, %v368_v18  ;;  %v768_v16 = vld [vmem:[#allocation8] sm:$0xff] }
 0x2a9   :  { %750 = vmatpush.msra.mxu1 %v730_v20  ;;  %v518_v36 = vor.u32 1.1754944e-38, %v517_v32  ;;  %vm516_vm11 = vcmp.eq.f32.partialorder %v515_v34, 8.507059e+37 }
 0x2aa   :  { %v524_v23 = vmul.f32 %v906_v14, %v523_v22 }
 0x2ac   :  { %v525_v25 = vadd.f32 %v906_v14, %v524_v23 }
 0x2ad   :  { %v908_v26 = vpop.eup %907 }
 0x2ae   :  { %v529_v28 = vsel %vm528_vm6, %v906_v14, %v525_v25  ;;  %v507_v10 = vmul.f32 %v908_v26, %v502_v17  ;;  %v672_v29 = vpop.xlane.xlu1 %671  ;;  %vm512_vm8 = vweird.f32 %v908_v26  ;;  %vm429_vm6 = vcmask 130112   ;;  %v770_v14 = vld [vmem:[#allocation8 + $0x10] sm:$0xff] }
 0x2af   :  { %v534_v60 = vsel %vm531_vm7, %v533_v27, %v529_v28  ;;  %909 = vrcp.f32 %v672_v29  ;;  %vm513_vm10 = vmor %vm511_vm9, %vm512_vm8  ;;  %v699_v42 = vand.u32 2147483648, %v672_v29  ;;  %v697_v44 = vand.u32 2147483647, %v672_v29  ;;  %795 = vmatpush.msrb.mxu2 %v770_v14 }
 0x2b0   :  { %v508_v30 = vsub.f32 1.0, %v507_v10  ;;  %v535_v31 = vmul.f32 %v1157_v5, %v534_v60  ;;  %vm693_vm13 = vweird.f32 %v672_v29  ;;  %vm596_vm7 = vcmask 195712  }
 0x2b1   :  { %v700_v48 = vor.u32 1.1754944e-38, %v699_v42  ;;  %vm698_vm15 = vcmp.eq.f32.partialorder %v697_v44, 8.507059e+37  ;;  %796 = vmatpush.msrb.mxu2 %v769_v15 }
 0x2b2   :  { %v509_v33 = vmul.f32 %v908_v26, %v508_v30  ;;  %846 = vmatmul.msk.f32.vlgmr.msrb.gmra.mxu1 %vm111_vm1, %v535_v31 }
 0x2b3   :  { %797 = vmatpush.msrb.mxu2 %v768_v16 }
 0x2b4   :  { %v510_v8 = vadd.f32 %v908_v26, %v509_v33 }
 0x2b5   :  { %v910_v35 = vpop.eup %909 }
 0x2b6   :  { %v514_v37 = vsel %vm513_vm10, %v908_v26, %v510_v8  ;;  %v689_v38 = vmul.f32 %v910_v35, %v672_v29  ;;  %v669_v39 = vpop.xlane.xlu1 %668  ;;  %vm694_vm12 = vweird.f32 %v910_v35 }
 0x2b7   :  { %v519_v40 = vsel %vm516_vm11, %v518_v36, %v514_v37  ;;  %911 = vrcp.f32 %v669_v39  ;;  %vm695_vm14 = vmor %vm693_vm13, %vm694_vm12  ;;  %v684_v55 = vand.u32 2147483648, %v669_v39  ;;  %vm678_vm3 = vweird.f32 %v669_v39 }
 0x2b8   :  { %v690_v41 = vsub.f32 1.0, %v689_v38  ;;  %v520_v5 = vmul.f32 %v1161_v12, %v519_v40  ;;  %v682_v56 = vand.u32 2147483647, %v669_v39 }
 0x2b9   :  { %v685_v59 = vor.u32 1.1754944e-38, %v684_v55 }
 0x2ba   :  { %v691_v43 = vmul.f32 %v910_v35, %v690_v41  ;;  %845 = vmatmul.msk.f32.vlgmr.msrb.gmra.mxu3 %vm111_vm1, %v520_v5  ;;  %vm683_vm5 = vcmp.eq.f32.partialorder %v682_v56, 8.507059e+37 }
 0x2bc   :  { %v692_v45 = vadd.f32 %v910_v35, %v691_v43 }
 0x2bd   :  { %v912_v46 = vpop.eup %911 }
 0x2be   :  { %v696_v49 = vsel %vm695_vm14, %v910_v35, %v692_v45  ;;  %v674_v50 = vmul.f32 %v912_v46, %v669_v39  ;;  %vm679_vm2 = vweird.f32 %v912_v46 }
 0x2bf   :  { %v701_v51 = vsel %vm698_vm15, %v700_v48, %v696_v49  ;;  %vm680_vm4 = vmor %vm678_vm3, %vm679_vm2 }
 0x2c0   :  { %v675_v47 = vsub.f32 1.0, %v674_v50  ;;  %v702_v52 = vmul.f32 %v1167_v19, %v701_v51 }
 0x2c2   :  { %v676_v53 = vmul.f32 %v912_v46, %v675_v47  ;;  %852 = vmatmul.msk.f32.vlgmr.msra.gmra.mxu1 %vm111_vm1, %v702_v52 }
 0x2c4   :  { %v677_v12 = vadd.f32 %v912_v46, %v676_v53 }
 0x2c6   :  { %v681_v57 = vsel %vm680_vm4, %v912_v46, %v677_v12 }
 0x2c7   :  { %v686_v61 = vsel %vm683_vm5, %v685_v59, %v681_v57 }
 0x2c8   :  { %v687_v63 = vmul.f32 %v1172_v21, %v686_v61 }
 0x2ce   :  { %v704_v62 = vpop.permute.xlu1 %703 }
 0x2cf   :  { %724 = vmatpush.msra.mxu3 %v704_v62 }
 0x2d0   :  { %851 = vmatmul.msk.f32.vlgmr.msra.gmra.mxu3 %vm111_vm1, %v687_v63 }
 0x315   :  { %v234_v19 = vpop.f32.mrf.mxu3 }
 0x316   :  { %263 = vst.msk [vmem:[#allocation2] sm:$0xff] %vm111_vm1, %v234_v19 }
 0x31e   :  { %v260_v0 = vpop.f32.mrf.mxu3 }
 0x31f   :  { %264 = vst.msk [vmem:[#allocation2 + $0x8] sm:$0xff] %vm111_vm1, %v260_v0  ;;  %vm763_vm1 = vcmask 261312  }
 0x325   :  { %v418_v2 = vpop.f32.mrf.mxu1 }
 0x326   :  { %v392_v1 = vpop.f32.mrf.mxu3 }
 0x327   :  { %423 = vrot.lane.b32.xlu0 %v392_v1, %s1017_s27 }
 0x32f   :  { %v585_v3 = vpop.f32.mrf.mxu1 }
 0x330   :  { %592 = vrot.lane.b32.xlu1 %v585_v3, %s1031_s19 }
 0x33d   :  { %v559_v4 = vpop.f32.mrf.mxu3 }
 0x33e   :  { %590 = vrot.lane.b32.xlu2 %v559_v4, %s1031_s19 }
 0x33f   :  { %v752_v54 = vpop.f32.mrf.mxu1 }
 0x346   :  { %425 = vrot.lane.b32.xlu2 %v418_v2, %s1017_s27 }
 0x353   :  { %v726_v21 = vpop.f32.mrf.mxu3 }
 0x354   :  { %757 = vrot.lane.b32.xlu0 %v726_v21, %s1032_s20 }
 0x35c   :  { %759 = vrot.lane.b32.xlu0 %v752_v54, %s1032_s20 }
 0x398   :  { %v591_v6 = vpop.permute.xlu2 %590 }
 0x399   :  { %v424_v7 = vpop.permute.xlu0 %423 }
 0x39a   :  { %430 = vst.msk [vmem:[#allocation2] sm:$0xff] %vm429_vm6, %v424_v7 }
 0x39b   :  { %597 = vst.msk [vmem:[#allocation2] sm:$0xff] %vm596_vm7, %v591_v6 }
 0x3a0   :  { %v426_v9 = vpop.permute.xlu2 %425 }
 0x3a1   :  { %431 = vst.msk [vmem:[#allocation2 + $0x8] sm:$0xff] %vm429_vm6, %v426_v9 }
 0x3a2   :  { %v593_v11 = vpop.permute.xlu1 %592 }
 0x3a3   :  { %598 = vst.msk [vmem:[#allocation2 + $0x8] sm:$0xff] %vm596_vm7, %v593_v11 }
 0x3c6   :  { %v758_v17 = vpop.permute.xlu0 %757 }
 0x3c7   :  { %764 = vst.msk [vmem:[#allocation2] sm:$0xff] %vm763_vm1, %v758_v17 }
 0x3ce   :  { %v760_v18 = vpop.permute.xlu0 %759  ;;  %v766_v20 = vld [vmem:[#allocation2] sm:$0xff] }
 0x3cf   :  { %765 = vst.msk [vmem:[#allocation2 + $0x8] sm:$0xff] %vm763_vm1, %v760_v18  ;;  %853 = vmatmul.msk.f32.vlgmr.msrb.gmra.mxu2 %vm78_vm0, %v766_v20 }
 0x3d6   :  { %v767_v22 = vld [vmem:[#allocation2 + $0x8] sm:$0xff] }
 0x3d7   :  { %854 = vmatmul.msk.f32.gmra.mxu2 %vm78_vm0, %v767_v22 }
 0x452   :  { %v799_v23 = vpop.f32.mrf.mxu2 }
 0x453   :  { %v800_v24 = vadd.f32 %v880_v58, %v799_v23 }
 0x455   :  { %805 = vst.msk [vmem:[#allocation9] sm:$0xff] %vm78_vm0, %v800_v24 }
 0x45a   :  { %v802_v25 = vpop.f32.mrf.mxu2 }
 0x45b   :  { %v803_v26 = vadd.f32 %v880_v58, %v802_v25 }
 0x45d   :  { %806 = vst.msk [vmem:[#allocation9 + $0x8] sm:$0xff] %vm78_vm0, %v803_v26 }
 0x45e   :  { %819 = dma.vmem_to_hbm [thread:$0]  %s812_s24, 256, %s814_s29, [#allocation5], %s1016_s26, %s1016_s26, %s1017_s27  }
 0x45f   :  { %1013 = dma.done.wait [#allocation5], 256  }
 0x460   :  { %1014 = vsyncadd [#allocation5], 4294967040 }
 0x461   :  { %824 = vsyncpa [#allocation4], 1 }
 0x462   :  { %825 = vsyncpa [#allocation7], 1 }
 0x463   :  { %826 = vsyncpa [#allocation5], 1 }

</bundles_post_ra>
